<compile_context>
chip_gen: v7x
topology: tpu7x:2x2x1
jax: 0.10.0
libtpu: 0.0.40
codegen_flags: <defaults>
</compile_context>

<pallas_src>
import jax
import jax.numpy as jnp
from jax.experimental import pallas as pl
from jax.experimental.pallas import tpu as pltpu


LANE = 128      # lane width (last-dim tiling)
SUBLANE = 8     # sublane width (second-to-last-dim tiling)
MAX_TB = 512    # batch-tile cap (sweepable: 512/1024)


def _round_up(x, m):
    return ((x + m - 1) // m) * m


def _choose_batch_tile(batch):
    """Batch tile: single tiny tile for batch<=8, otherwise >=2 tiles
    (v7x megacore) capped at MAX_TB rows."""
    if batch <= SUBLANE:
        return _round_up(max(batch, 1), SUBLANE)
    half = _round_up((batch + 1) // 2, SUBLANE)
    return min(MAX_TB, half)


def value_mlp_kernel(x_ref, w1_ref, b1_ref, w2_ref, b2_ref, w3_ref, b3_ref,
                     out_ref):
    # One (tb, num_inputs) tile of states per grid step; weights stay resident.
    x = x_ref[...].astype(jnp.bfloat16)                       # (tb, num_inputs)

    h1 = jnp.dot(x, w1_ref[...],
                 preferred_element_type=jnp.float32) + b1_ref[...]
    h1 = jnp.maximum(h1, 0.0)

    h2 = jnp.dot(h1.astype(jnp.bfloat16), w2_ref[...],
                 preferred_element_type=jnp.float32) + b2_ref[...]
    h2 = jnp.maximum(h2, 0.0)

    # Final layer has a single output unit: lane-reduce on the XLU instead of
    # a lane-padded MXU matmul; writes a dense (tb, 1) block.
    w3_row = w3_ref[...].astype(jnp.float32)                   # (1, h_pad)
    v = jnp.sum(h2 * w3_row, axis=-1, keepdims=True) + b3_ref[...]
    out_ref[...] = v.astype(out_ref.dtype)


def value_network_forward(state, params):
    """state: (batch, num_inputs) f32.  Returns (batch, 1) f32."""
    w1, b1, w2, b2, w3, b3 = params
    batch, num_inputs = state.shape
    h_pad = w2.shape[0]

    tb = _choose_batch_tile(batch)
    b_pad = _round_up(batch, tb)
    # Only the batch axis is (cheaply) padded; feature dim is left untouched.
    x_in = state if b_pad == batch else jnp.pad(
        state, ((0, b_pad - batch), (0, 0)))

    grid = (b_pad // tb,)

    # Constant-index operands: resident in VMEM, single-buffered (no re-DMA).
    def resident(a):
        return pl.BlockSpec(a.shape, lambda i: (0, 0),
                            pipeline_mode=pl.Buffered(1))

    weight_bytes = sum(int(a.size) * a.dtype.itemsize for a in params)
    # 1x resident weights + streamed tiles + f32 activation temps + headroom.
    vmem_limit = int(min(max(2 * weight_bytes + 8 * tb * h_pad * 4, 32 << 20),
                         128 << 20))

    flops = 2 * b_pad * (num_inputs * h_pad + h_pad * h_pad + h_pad)
    bytes_accessed = (int(x_in.size) * x_in.dtype.itemsize
                      + weight_bytes + b_pad * 4)

    out = pl.pallas_call(
        value_mlp_kernel,
        out_shape=jax.ShapeDtypeStruct((b_pad, 1), jnp.float32),
        grid=grid,
        in_specs=[
            pl.BlockSpec((tb, num_inputs), lambda i: (i, 0)),  # states stream
            resident(w1), resident(b1),
            resident(w2), resident(b2),
            resident(w3), resident(b3),
        ],
        out_specs=pl.BlockSpec((tb, 1), lambda i: (i, 0)),
        compiler_params=pltpu.CompilerParams(
            dimension_semantics=("parallel",),
            vmem_limit_bytes=vmem_limit),
        cost_estimate=pl.CostEstimate(flops=flops, transcendentals=0,
                                      bytes_accessed=bytes_accessed),
    )(x_in, w1, b1, w2, b2, w3, b3)

    return out if b_pad == batch else out[:batch]


def init_params(key, num_inputs, hidden_size):
    """PyTorch-Linear-like U(-1/sqrt(fan_in), 1/sqrt(fan_in)) init.
    Hidden dims zero-padded to lane multiples; the input-feature dim is NOT
    padded (kernel consumes it directly).  Weights bf16, biases f32.
    Weights stored as (in_features, out_features); layer 3 as a (1, h_pad) row."""
    ks = jax.random.split(key, 6)
    h_pad = _round_up(hidden_size, LANE)

    def lin(kw, kb, fan_in, fan_out, in_pad, out_pad):
        bound = 1.0 / float(fan_in) ** 0.5
        w = jax.random.uniform(kw, (fan_in, fan_out), jnp.float32, -bound, bound)
        b = jax.random.uniform(kb, (fan_out,), jnp.float32, -bound, bound)
        w_p = (jnp.zeros((in_pad, out_pad), jnp.float32)
               .at[:fan_in, :fan_out].set(w).astype(jnp.bfloat16))
        b_p = jnp.zeros((1, out_pad), jnp.float32).at[0, :fan_out].set(b)
        return w_p, b_p

    w1, b1 = lin(ks[0], ks[1], num_inputs, hidden_size, num_inputs, h_pad)
    w2, b2 = lin(ks[2], ks[3], hidden_size, hidden_size, h_pad, h_pad)

    bound3 = 1.0 / float(hidden_size) ** 0.5
    w3v = jax.random.uniform(ks[4], (hidden_size,), jnp.float32, -bound3, bound3)
    b3v = jax.random.uniform(ks[5], (1,), jnp.float32, -bound3, bound3)
    w3 = (jnp.zeros((1, h_pad), jnp.float32)
          .at[0, :hidden_size].set(w3v).astype(jnp.bfloat16))
    b3 = b3v.reshape(1, 1)
    return (w1, b1, w2, b2, w3, b3)


def _reference_forward(state, params):
    """Pure-JAX reference using the same bf16-quantized weights/activations."""
    w1, b1, w2, b2, w3, b3 = params
    x = state.astype(jnp.bfloat16).astype(jnp.float32)
    h1 = jnp.maximum(x @ w1.astype(jnp.float32) + b1, 0.0)
    h1 = h1.astype(jnp.bfloat16).astype(jnp.float32)
    h2 = jnp.maximum(h1 @ w2.astype(jnp.float32) + b2, 0.0)
    v = jnp.sum(h2 * w3.astype(jnp.float32), axis=-1, keepdims=True) + b3
    return v


if __name__ == "__main__":
    batch = 2
    num_inputs = 4
    hidden_size = 32

    key = jax.random.PRNGKey(0)
    k_state, k_params = jax.random.split(key)
    state = jax.random.normal(k_state, (batch, num_inputs), dtype=jnp.float32)
    params = init_params(k_params, num_inputs, hidden_size)

    value = value_network_forward(state, params)
    value = jax.block_until_ready(value)

    assert value.shape == (batch, 1)
    assert bool(jnp.all(jnp.isfinite(value)))

    ref = _reference_forward(state, params)
    assert jnp.allclose(value, ref, atol=1e-2, rtol=1e-2), (value, ref)

    print("KERNEL_OK")
</pallas_src>

<mosaic_0001>
module attributes {stable_mosaic.version = 11 : i64} {
  func.func @value_mlp_kernel(%arg0: i32, %arg1: memref<8x4xf32, #tpu.memory_space<vmem>>, %arg2: memref<4x128xbf16, #tpu.memory_space<vmem>>, %arg3: memref<1x128xf32, #tpu.memory_space<vmem>>, %arg4: memref<128x128xbf16, #tpu.memory_space<vmem>>, %arg5: memref<1x128xf32, #tpu.memory_space<vmem>>, %arg6: memref<1x128xbf16, #tpu.memory_space<vmem>>, %arg7: memref<1x1xf32, #tpu.memory_space<vmem>>, %arg8: memref<8x1xf32, #tpu.memory_space<vmem>>) attributes {dimension_semantics = [#tpu.dimension_semantics<parallel>], iteration_bounds = array<i64: 1>, scalar_prefetch = 0 : i64, scratch_operands = 0 : i64, tpu.core_type = #tpu.core_type<tc>, window_params = [{transform_indices = @transform_0, window_bounds = array<i64: 8, 4>}, {pipeline_mode = #tpu.pipeline_mode<synchronous>, transform_indices = @transform_1, window_bounds = array<i64: 4, 128>}, {pipeline_mode = #tpu.pipeline_mode<synchronous>, transform_indices = @transform_2, window_bounds = array<i64: 1, 128>}, {pipeline_mode = #tpu.pipeline_mode<synchronous>, transform_indices = @transform_3, window_bounds = array<i64: 128, 128>}, {pipeline_mode = #tpu.pipeline_mode<synchronous>, transform_indices = @transform_4, window_bounds = array<i64: 1, 128>}, {pipeline_mode = #tpu.pipeline_mode<synchronous>, transform_indices = @transform_5, window_bounds = array<i64: 1, 128>}, {pipeline_mode = #tpu.pipeline_mode<synchronous>, transform_indices = @transform_6, window_bounds = array<i64: 1, 1>}, {transform_indices = @transform_7, window_bounds = array<i64: 8, 1>}]} {
    %c0 = arith.constant 0 : index
    %c0_0 = arith.constant 0 : index
    %0 = vector.load %arg1[%c0, %c0_0] : memref<8x4xf32, #tpu.memory_space<vmem>>, vector<8x4xf32>
    %1 = arith.truncf %0 : vector<8x4xf32> to vector<8x4xbf16>
    %c0_1 = arith.constant 0 : index
    %c0_2 = arith.constant 0 : index
    %2 = vector.load %arg2[%c0_1, %c0_2] : memref<4x128xbf16, #tpu.memory_space<vmem>>, vector<4x128xbf16>
    %cst = arith.constant dense<0.000000e+00> : vector<8x128xf32>
    %3 = tpu.matmul %1, %2, %cst {dimension_numbers = #tpu.dot_dimension_numbers<[1], [0], [0], [1], [0, 0, 1, 1], [], []>} : vector<8x4xbf16>, vector<4x128xbf16>, vector<8x128xf32> -> vector<8x128xf32>
    %c0_3 = arith.constant 0 : index
    %c0_4 = arith.constant 0 : index
    %4 = vector.load %arg3[%c0_3, %c0_4] : memref<1x128xf32, #tpu.memory_space<vmem>>, vector<1x128xf32>
    %5 = vector.broadcast %4 : vector<1x128xf32> to vector<8x128xf32>
    %6 = arith.addf %3, %5 : vector<8x128xf32>
    %cst_5 = arith.constant 0.000000e+00 : f32
    %7 = vector.broadcast %cst_5 : f32 to vector<8x128xf32>
    %8 = arith.maximumf %6, %7 : vector<8x128xf32>
    %9 = arith.truncf %8 : vector<8x128xf32> to vector<8x128xbf16>
    %c0_6 = arith.constant 0 : index
    %c0_7 = arith.constant 0 : index
    %10 = vector.load %arg4[%c0_6, %c0_7] : memref<128x128xbf16, #tpu.memory_space<vmem>>, vector<128x128xbf16>
    %cst_8 = arith.constant dense<0.000000e+00> : vector<8x128xf32>
    %11 = tpu.matmul %9, %10, %cst_8 {dimension_numbers = #tpu.dot_dimension_numbers<[1], [0], [0], [1], [0, 0, 1, 1], [], []>} : vector<8x128xbf16>, vector<128x128xbf16>, vector<8x128xf32> -> vector<8x128xf32>
    %c0_9 = arith.constant 0 : index
    %c0_10 = arith.constant 0 : index
    %12 = vector.load %arg5[%c0_9, %c0_10] : memref<1x128xf32, #tpu.memory_space<vmem>>, vector<1x128xf32>
    %13 = vector.broadcast %12 : vector<1x128xf32> to vector<8x128xf32>
    %14 = arith.addf %11, %13 : vector<8x128xf32>
    %cst_11 = arith.constant 0.000000e+00 : f32
    %15 = vector.broadcast %cst_11 : f32 to vector<8x128xf32>
    %16 = arith.maximumf %14, %15 : vector<8x128xf32>
    %c0_12 = arith.constant 0 : index
    %c0_13 = arith.constant 0 : index
    %17 = vector.load %arg6[%c0_12, %c0_13] : memref<1x128xbf16, #tpu.memory_space<vmem>>, vector<1x128xbf16>
    %18 = arith.extf %17 : vector<1x128xbf16> to vector<1x128xf32>
    %19 = vector.broadcast %18 : vector<1x128xf32> to vector<8x128xf32>
    %20 = arith.mulf %16, %19 : vector<8x128xf32>
    %cst_14 = arith.constant dense<0.000000e+00> : vector<8xf32>
    %21 = vector.multi_reduction <add>, %20, %cst_14 [1] : vector<8x128xf32> to vector<8xf32>
    %22 = vector.shape_cast %21 : vector<8xf32> to vector<8x1xf32>
    %c0_15 = arith.constant 0 : index
    %c0_16 = arith.constant 0 : index
    %23 = vector.load %arg7[%c0_15, %c0_16] : memref<1x1xf32, #tpu.memory_space<vmem>>, vector<1x1xf32>
    %24 = vector.broadcast %23 : vector<1x1xf32> to vector<8x1xf32>
    %25 = arith.addf %22, %24 : vector<8x1xf32>
    %c0_17 = arith.constant 0 : index
    %c0_18 = arith.constant 0 : index
    %26 = vector.load %arg8[%c0_17, %c0_18] : memref<8x1xf32, #tpu.memory_space<vmem>>, vector<8x1xf32>
    tpu.vector_store %arg8[%c0_17, %c0_18], %25 {strides = array<i32>} : memref<8x1xf32, #tpu.memory_space<vmem>>, vector<8x1xf32>,
    return
  }
  func.func @transform_0(%arg0: i32) -> (i32, i32) {
    %c0_i32 = arith.constant 0 : i32
    %c0_i32_0 = arith.constant 0 : i32
    return %arg0, %c0_i32 : i32, i32
  }
  func.func @transform_1(%arg0: i32) -> (i32, i32) {
    %c0_i32 = arith.constant 0 : i32
    %c0_i32_0 = arith.constant 0 : i32
    %c0_i32_1 = arith.constant 0 : i32
    return %c0_i32, %c0_i32_0 : i32, i32
  }
  func.func @transform_2(%arg0: i32) -> (i32, i32) {
    %c0_i32 = arith.constant 0 : i32
    %c0_i32_0 = arith.constant 0 : i32
    %c0_i32_1 = arith.constant 0 : i32
    return %c0_i32, %c0_i32_0 : i32, i32
  }
  func.func @transform_3(%arg0: i32) -> (i32, i32) {
    %c0_i32 = arith.constant 0 : i32
    %c0_i32_0 = arith.constant 0 : i32
    %c0_i32_1 = arith.constant 0 : i32
    return %c0_i32, %c0_i32_0 : i32, i32
  }
  func.func @transform_4(%arg0: i32) -> (i32, i32) {
    %c0_i32 = arith.constant 0 : i32
    %c0_i32_0 = arith.constant 0 : i32
    %c0_i32_1 = arith.constant 0 : i32
    return %c0_i32, %c0_i32_0 : i32, i32
  }
  func.func @transform_5(%arg0: i32) -> (i32, i32) {
    %c0_i32 = arith.constant 0 : i32
    %c0_i32_0 = arith.constant 0 : i32
    %c0_i32_1 = arith.constant 0 : i32
    return %c0_i32, %c0_i32_0 : i32, i32
  }
  func.func @transform_6(%arg0: i32) -> (i32, i32) {
    %c0_i32 = arith.constant 0 : i32
    %c0_i32_0 = arith.constant 0 : i32
    %c0_i32_1 = arith.constant 0 : i32
    return %c0_i32, %c0_i32_0 : i32, i32
  }
  func.func @transform_7(%arg0: i32) -> (i32, i32) {
    %c0_i32 = arith.constant 0 : i32
    %c0_i32_0 = arith.constant 0 : i32
    return %arg0, %c0_i32 : i32, i32
  }
}

</mosaic_0001>

<bundles_post_ra>
// kernel: tpu_custom_call.1
= control target key start
LH: loop header
LB: loop body
LE: loop exit
PB: predicated region body
PF: predicated region fallthrough
CT: control target
= control target key end

     0   :  { %s403_s0 = inlined_call_operand.vmem [shape: f32[8,4], index: 0, kind: input, shape index: {}]   ;;  %s404_s1 = inlined_call_operand.vmem [shape: bf16[4,128], index: 1, kind: input, shape index: {}]   ;;  %s405_s2 = inlined_call_operand.vmem [shape: f32[1,128], index: 2, kind: input, shape index: {}]   ;;  %s406_s3 = inlined_call_operand.hbm [shape: bf16[128,128], index: 3, kind: input, shape index: {}]   ;;  %s407_s4 = inlined_call_operand.vmem [shape: f32[1,128], index: 4, kind: input, shape index: {}]   ;;  %s408_s5 = inlined_call_operand.vmem [shape: bf16[1,128], index: 5, kind: input, shape index: {}]   ;;  %s409_s6 = inlined_call_operand.<no memory space> [shape: f32[1,1], index: 6, kind: input, shape index: {}]   ;;  %s410_s7 = inlined_call_operand.vmem [shape: f32[8,1], index: 7, kind: output, shape index: {}]  }
   0x1   :  { %v12_v0 = vstv %s409_s6 }
   0x2   :  { %13 = vst [vmem:[#allocation2] sm:$0x1] %v12_v0 }
   0x3   :  { %14 = vsyncpa [#allocation4], 0  ;;  %s325_s26 = smov [#allocation3]   ;;  %s301_s30 = scalar_lea.hbm %s406_s3, 1024 }
   0x4   :  { %s26_s27 = sshll.u32 %s325_s26, 4  ;;  %p302_p0 = scmp.ne.s32.totalorder %s406_s3, %s301_s30  ;;  %s27_s27 = int_to_ptr.vmem [resolvable:$true] %s26_s27 }
   0x5   :  { %p305_p1 = scmp.lt.u32.totalorder %s301_s30, %s406_s3 }
   0x7   :  { %p307_p2 = pnand %p305_p1, %p302_p0 }
   0x9   :  { %310 = shalt.err (!%p307_p2)
}
   0xa   :  { %s311_s6 = scalar_lea.vmem %s27_s27, 1024  ;;  %p316_p4 = scmp.lt.s32.totalorder %s27_s27, %s27_s27 }
   0xb   :  { %p312_p3 = scmp.ne.s32.totalorder %s27_s27, %s311_s6  ;;  %p317_p5 = scmp.lt.s32.totalorder %s311_s6, %s311_s6 }
   0xd   :  { %p318_p6 = por %p317_p5, %p316_p4 }
   0xf   :  { %p319_p7 = pnand %p318_p6, %p312_p3 }
  0x11   :  { %322 = shalt.err (!%p319_p7)
}
  0x12   :  { %s326_s12 = smov 64   ;;  %s327_s13 = smov 4  }
  0x13   :  { %32 = dma.hbm_to_vmem [thread:$0]  %s406_s3, 1024, %s27_s27, [#allocation4], %s326_s12, %s326_s12, %s327_s13  }
  0x14   :  { %323 = dma.done.wait [#allocation4], 1024  }
  0x15   :  { %324 = vsyncadd [#allocation4], 4294966272  ;;  %v328_v1 = vmov 0.0   ;;  %vm329_vm0 = vmmov 0   ;;  %vm57_vm1 = vcmask 1041408   ;;  %v43_v3 = vld [vmem:[%s403_s0] sm:$0xff]  ;;  %v217_v22 = vlaneseq }
  0x16   :  { %262 = vmatprep.subr.bf16.mxu0 %v328_v1  ;;  %264 = vmatprep.mubr.msk.bf16.mxu0 %vm329_vm0, %v328_v1  ;;  %v45_v2 = vld [vmem:[%s404_s1] sm:$0x3]  ;;  %v44_v5 = vpack.c.bf16 %v43_v3, %v43_v3  ;;  %vm53_vm2 = vcmask 31744   ;;  %v294_v7 = vld [vmem:[#allocation3 + $0x8] sm:$0xff]   ;;  %v295_v8 = vld [vmem:[#allocation3 + $0x10] sm:$0xff]   ;;  %vm232_vm3 = vcmask 7168  }
  0x17   :  { %268 = vmatprep.subr.bf16.mxu1 %v328_v1  ;;  %284 = vmatprep.mubr.msk.bf16.mxu1 %vm329_vm0, %v328_v1  ;;  %v59_v4 = vsel %vm57_vm1, %v45_v2, 0  ;;  %v293_v6 = vld [vmem:[#allocation3] sm:$0xff]   ;;  %v296_v9 = vld [vmem:[#allocation3 + $0x18] sm:$0xff]   ;;  %v298_v11 = vld [vmem:[#allocation3 + $0x28] sm:$0xff]   ;;  %v218_v23 = vshrl.u32 %v217_v22, 7 }
  0x18   :  { %263 = vmatpush3.bf16.msra.mxu0 %v59_v4  ;;  %269 = vmatpush3.bf16.msra.mxu1 %v293_v6  ;;  %v297_v10 = vld [vmem:[#allocation3 + $0x20] sm:$0xff]   ;;  %v299_v12 = vld [vmem:[#allocation3 + $0x30] sm:$0xff]   ;;  %v300_v13 = vld [vmem:[#allocation3 + $0x38] sm:$0xff]  }
  0x19   :  { %270 = vmatprep.subr.bf16.mxu1 %v328_v1  ;;  %v239_v14 = vld [vmem:[%s405_s2] ss:$0 sm:$0xff]  ;;  %v219_v26 = vsub.s32 0, %v218_v23 }
  0x1a   :  { %v215_v24 = vld [vmem:[%s408_s5] sm:$0x1] }
  0x1b   :  { %265 = vmatmul.mubr.msk.bf16.vlgmr.msra.gmra.mrb[0].mxu0 %vm53_vm2, %v44_v5  ;;  %v216_v25 = vunpack.c.l.bf16 %v215_v24  ;;  %v241_v27 = vld [vmem:[%s407_s4] ss:$0 sm:$0xff] }
  0x1c   :  { %271 = vmatpush3.bf16.msra.mxu1 %v294_v7  ;;  %v250_v36 = vld [vmem:[#allocation2] ss:$0 sm:$0xff] }
  0x1d   :  { %272 = vmatprep.subr.bf16.mxu1 %v328_v1  ;;  %v220_v31 = vrot.slane %v216_v25, %v219_v26 }
  0x20   :  { %273 = vmatpush3.bf16.msra.mxu1 %v295_v8 }
  0x21   :  { %274 = vmatprep.subr.bf16.mxu1 %v328_v1 }
  0x24   :  { %275 = vmatpush3.bf16.msra.mxu1 %v296_v9 }
  0x25   :  { %276 = vmatprep.subr.bf16.mxu1 %v328_v1 }
  0x28   :  { %277 = vmatpush3.bf16.msra.mxu1 %v297_v10 }
  0x29   :  { %278 = vmatprep.subr.bf16.mxu1 %v328_v1 }
  0x2c   :  { %279 = vmatpush3.bf16.msra.mxu1 %v298_v11 }
  0x2d   :  { %280 = vmatprep.subr.bf16.mxu1 %v328_v1 }
  0x30   :  { %281 = vmatpush3.bf16.msra.mxu1 %v299_v12 }
  0x31   :  { %282 = vmatprep.subr.bf16.mxu1 %v328_v1 }
  0x34   :  { %283 = vmatpush3.bf16.msra.mxu1 %v300_v13 }
  0xee   :  { %v95_v15 = vpop.f32.mrb[0].mxu0 }
  0xef   :  { %v96_v16 = vadd.f32 %v239_v14, %v95_v15  ;;  %v266_v17 = vpop.f32.mrb[1].mxu0 }
  0xf0   :  { %v98_v18 = vpop.f32.mrb[2].mxu0 }
  0xf1   :  { %v101_v19 = vmax.f32 %v96_v16, 0.0  ;;  %v267_v20 = vpop.f32.mrb[3].mxu0 }
  0xf3   :  { %v102_v21 = vpack.c.bf16 %v101_v19, %v101_v19 }
  0xf5   :  { %285 = vmatmul.mubr.bf16.vlgmr.msra.gmra.mrb[0].mxu1 %v102_v21 }
 0x1c8   :  { %v208_v28 = vpop.f32.mrb[0].mxu1 }
 0x1c9   :  { %v209_v29 = vadd.f32 %v241_v27, %v208_v28  ;;  %v286_v30 = vpop.f32.mrb[1].mxu1 }
 0x1ca   :  { %v211_v32 = vpop.f32.mrb[2].mxu1 }
 0x1cb   :  { %v214_v33 = vmax.f32 %v209_v29, 0.0  ;;  %v287_v34 = vpop.f32.mrb[3].mxu1 }
 0x1cd   :  { %v221_v35 = vmul.f32 %v220_v31, %v214_v33 }
 0x1cf   :  { %222 = vadd.xlane.f32.xlu0 %v221_v35 }
 0x25c   :  { %v223_v37 = vpop.xlane.xlu0 %222 }
 0x25d   :  { %v231_v38 = vadd.f32 %v250_v36, %v223_v37 }
 0x25f   :  { %233 = vst.msk [vmem:[%s410_s7] sm:$0xff] %vm232_vm3, %v231_v38 }
 0x260   :  { %238 = vsyncpa [#allocation4], 1 }

</bundles_post_ra>
